<compile_context>
chip_gen: v6e
topology: v6e:2x2x1
jax: 0.10.0
libtpu: 0.0.40
codegen_flags: <defaults>
</compile_context>

<pallas_src>
import functools

import jax
import jax.numpy as jnp
from jax import lax
from jax.experimental import pallas as pl
from jax.experimental.pallas import tpu as pltpu

LANE = 128          # lane-padded class dimension
NEG_BIG = -1e9      # logit for padded classes -> exp underflows to exactly 0.0


def rnn_head_kernel(ids_ref, slab_ref, out_ref, *, n_steps, vp, hidden, bp):
    """Fused one-hot gather + Elman recurrence (row S-1 only) + Linear + softmax.

    ids_ref  : (n_steps,)      SMEM int32  last-column token ids x[:, S-1]
    slab_ref : (vp+2H+8, 128)  VMEM f32    packed weights:
                 rows [0, vp)        lanes [0, H)   emb @ Wih^T + (b_ih+b_hh)
                 rows [vp, vp+H)     lanes [0, H)   Whh^T
                 rows [vp+H, vp+2H)  lanes [0,128)  Wlin^T zero-padded classes
                 row  vp+2H          lanes [0,128)  b_lin, padded classes -1e9
    out_ref  : (bp, 128)       VMEM f32    softmax probabilities (padded)
    """
    h_w = hidden
    # Static views into the packed slab (one input DMA covers every weight).
    emb_w = slab_ref[0:vp, 0:h_w]                         # (VP, H)
    whh_t = slab_ref[vp:vp + h_w, 0:h_w]                  # (H, H)
    wlin_t = slab_ref[vp + h_w:vp + 2 * h_w, :]           # (H, 128)
    blin = slab_ref[vp + 2 * h_w:vp + 2 * h_w + 1, :]     # (1, 128)

    # 1. One-hot gather of the pre-projected, bias-folded embeddings (1 MXU op).
    row = lax.broadcasted_iota(jnp.int32, (bp, vp), 0)
    col = lax.broadcasted_iota(jnp.int32, (bp, vp), 1)
    onehot = jnp.zeros((bp, vp), jnp.float32)
    for t in range(n_steps):                              # tiny static unroll
        onehot = onehot + jnp.where(
            (row == t) & (col == ids_ref[t]), 1.0, 0.0).astype(jnp.float32)
    xw = jnp.dot(onehot, emb_w, preferred_element_type=jnp.float32)   # (BP, H)

    # 2. Serial Elman recurrence; hidden states live only in vregs.
    hs = []
    h = jnp.tanh(xw[0:1, :])                 # t = 0: h_prev == 0 -> no matmul
    hs.append(h)
    for t in range(1, n_steps):
        h = jnp.tanh(xw[t:t + 1, :]
                     + jnp.dot(h, whh_t, preferred_element_type=jnp.float32))
        hs.append(h)

    # Assemble (BP, H) classifier input with iota-select; padded rows are 0
    # (deterministic) and are sliced away in the wrapper.
    rsel = lax.broadcasted_iota(jnp.int32, (bp, h_w), 0)
    h_all = jnp.zeros((bp, h_w), jnp.float32)
    for t in range(n_steps):
        h_all = jnp.where(rsel == t, hs[t], h_all)

    # 3. Classifier (lane-padded) + numerically stable softmax (exact division).
    logits = jnp.dot(h_all, wlin_t, preferred_element_type=jnp.float32) + blin
    m = jnp.max(logits, axis=-1, keepdims=True)
    e = jnp.exp(logits - m)                               # padded lanes -> 0.0
    out_ref[...] = e / jnp.sum(e, axis=-1, keepdims=True)


def pack_params(params):
    """One-time weight preparation (hoisted out of the per-call jit path)."""
    emb, w_ih, w_hh, b_ih, b_hh, w_lin, b_lin = params
    V, _ = emb.shape
    H = w_hh.shape[0]
    NCLS = w_lin.shape[0]                                  # 5
    VP = ((V + 7) // 8) * 8
    rows = VP + 2 * H + 8

    # Fold the input projection AND both biases into the embedding table:
    # gather(emb)[id] @ Wih^T + b == gather(emb @ Wih^T + b)[id]  (exact).
    emb_proj = emb @ w_ih.T + (b_ih + b_hh)[None, :]       # (V, H)

    slab = jnp.zeros((rows, LANE), jnp.float32)
    slab = slab.at[0:V, 0:H].set(emb_proj)                 # emb_proj (+bias)
    slab = slab.at[VP:VP + H, 0:H].set(w_hh.T)             # Whh^T
    slab = slab.at[VP + H:VP + 2 * H, 0:NCLS].set(w_lin.T) # Wlin^T (0-padded)
    slab = slab.at[VP + 2 * H, :].set(NEG_BIG)             # padded class bias
    slab = slab.at[VP + 2 * H, 0:NCLS].set(b_lin)          # real class bias
    meta = dict(vp=VP, hidden=H, ncls=NCLS)
    return slab, meta


def rnn_head_forward(x, slab, *, vp, hidden, ncls):
    """Inference path of TorchModule.forward (y=None branch)."""
    B, S = x.shape
    BP = ((B + 7) // 8) * 8                                # sublane-padded rows

    # output[:, -1, :] only reads RNN-batch row S-1 -> only its token ids.
    ids_last = x[:, S - 1].astype(jnp.int32)               # (B,) per-call prep

    out = pl.pallas_call(
        functools.partial(rnn_head_kernel,
                          n_steps=B, vp=vp, hidden=hidden, bp=BP),
        out_shape=jax.ShapeDtypeStruct((BP, LANE), jnp.float32),
        in_specs=[pl.BlockSpec(memory_space=pltpu.MemorySpace.SMEM),
                  pl.BlockSpec(memory_space=pltpu.MemorySpace.VMEM)],
        out_specs=pl.BlockSpec(memory_space=pltpu.MemorySpace.VMEM),
    )(ids_last, slab)
    return out[:B, :ncls]                                  # (B, 5)


def reference_forward(x, params):
    """Pure-JAX reference mirroring PyTorch semantics (batch_first=False RNN)."""
    emb, w_ih, w_hh, b_ih, b_hh, w_lin, b_lin = params
    x_emb = emb[x]                                         # (B, S, D)
    B, S, D = x_emb.shape
    H = w_hh.shape[0]

    def step(h, x_t):
        h_new = jnp.tanh(x_t @ w_ih.T + b_ih + h @ w_hh.T + b_hh)
        return h_new, h_new

    h0 = jnp.zeros((S, H), jnp.float32)
    _, outs = lax.scan(step, h0, x_emb)                    # (B, S, H) time-major
    last = outs[:, -1, :]                                  # (B, H)
    logits = last @ w_lin.T + b_lin
    return jax.nn.softmax(logits, axis=-1)


def init_params(vocab_size, vect_dim, hidden_size, key):
    k = jax.random.split(key, 7)
    emb = 0.1 * jax.random.normal(k[0], (vocab_size, vect_dim), jnp.float32)
    emb = emb.at[0].set(0.0)                               # padding_idx=0 row
    w_ih = 0.1 * jax.random.normal(k[1], (hidden_size, vect_dim), jnp.float32)
    w_hh = 0.1 * jax.random.normal(k[2], (hidden_size, hidden_size), jnp.float32)
    b_ih = 0.1 * jax.random.normal(k[3], (hidden_size,), jnp.float32)
    b_hh = 0.1 * jax.random.normal(k[4], (hidden_size,), jnp.float32)
    w_lin = 0.1 * jax.random.normal(k[5], (5, hidden_size), jnp.float32)
    b_lin = 0.1 * jax.random.normal(k[6], (5,), jnp.float32)
    return emb, w_ih, w_hh, b_ih, b_hh, w_lin, b_lin


if __name__ == "__main__":
    vocab_size, vect_dim, hidden_size = 11, 16, 32
    batch, seq = 2, 8

    key = jax.random.PRNGKey(0)
    kp, kx = jax.random.split(key)
    params = init_params(vocab_size, vect_dim, hidden_size, kp)
    x = jax.random.randint(kx, (batch, seq), 0, vocab_size, dtype=jnp.int32)

    slab, meta = pack_params(params)                       # once, at weight load
    fwd = jax.jit(functools.partial(rnn_head_forward, **meta))

    probs = jax.block_until_ready(fwd(x, slab))
    ref = jax.block_until_ready(reference_forward(x, params))

    assert probs.shape == (batch, 5)
    assert jnp.allclose(probs, ref, atol=1e-5, rtol=1e-5)
    print("KERNEL_OK")
</pallas_src>

<mosaic_0001>
module attributes {stable_mosaic.version = 11 : i64} {
  func.func @rnn_head_kernel(%arg0: memref<2xi32, #tpu.memory_space<smem>>, %arg1: memref<88x128xf32, #tpu.memory_space<vmem>>, %arg2: memref<8x128xf32, #tpu.memory_space<vmem>>) attributes {dimension_semantics = [], scalar_prefetch = 0 : i64, scratch_operands = 0 : i64, tpu.core_type = #tpu.core_type<tc>} {
    %c0 = arith.constant 0 : index
    %c0_0 = arith.constant 0 : index
    %0 = vector.load %arg1[%c0, %c0_0] : memref<88x128xf32, #tpu.memory_space<vmem>>, vector<16x32xf32>
    %c16 = arith.constant 16 : index
    %c0_1 = arith.constant 0 : index
    %1 = vector.load %arg1[%c16, %c0_1] : memref<88x128xf32, #tpu.memory_space<vmem>>, vector<32x32xf32>
    %c48 = arith.constant 48 : index
    %c0_2 = arith.constant 0 : index
    %2 = vector.load %arg1[%c48, %c0_2] : memref<88x128xf32, #tpu.memory_space<vmem>>, vector<32x128xf32>
    %c80 = arith.constant 80 : index
    %c0_3 = arith.constant 0 : index
    %3 = vector.load %arg1[%c80, %c0_3] : memref<88x128xf32, #tpu.memory_space<vmem>>, vector<1x128xf32>
    %4 = tpu.iota {dimensions = array<i32: 0>} : vector<8x16xi32>
    %5 = tpu.iota {dimensions = array<i32: 1>} : vector<8x16xi32>
    %cst = arith.constant 0.000000e+00 : f32
    %6 = vector.broadcast %cst : f32 to vector<8x16xf32>
    %c0_i32 = arith.constant 0 : i32
    %7 = vector.broadcast %c0_i32 : i32 to vector<8x16xi32>
    %8 = arith.cmpi eq, %4, %7 : vector<8x16xi32>
    %c0_4 = arith.constant 0 : index
    %9 = memref.load %arg0[%c0_4] : memref<2xi32, #tpu.memory_space<smem>>
    %10 = vector.broadcast %9 : i32 to vector<8x16xi32>
    %11 = arith.cmpi eq, %5, %10 : vector<8x16xi32>
    %12 = arith.andi %8, %11 : vector<8x16xi1>
    %cst_5 = arith.constant 1.000000e+00 : f32
    %cst_6 = arith.constant 0.000000e+00 : f32
    %13 = vector.broadcast %cst_5 : f32 to vector<8x16xf32>
    %14 = vector.broadcast %cst_6 : f32 to vector<8x16xf32>
    %15 = arith.select %12, %13, %14 : vector<8x16xi1>, vector<8x16xf32>
    %16 = arith.addf %6, %15 : vector<8x16xf32>
    %c1_i32 = arith.constant 1 : i32
    %17 = vector.broadcast %c1_i32 : i32 to vector<8x16xi32>
    %18 = arith.cmpi eq, %4, %17 : vector<8x16xi32>
    %c1 = arith.constant 1 : index
    %19 = memref.load %arg0[%c1] : memref<2xi32, #tpu.memory_space<smem>>
    %20 = vector.broadcast %19 : i32 to vector<8x16xi32>
    %21 = arith.cmpi eq, %5, %20 : vector<8x16xi32>
    %22 = arith.andi %18, %21 : vector<8x16xi1>
    %cst_7 = arith.constant 1.000000e+00 : f32
    %cst_8 = arith.constant 0.000000e+00 : f32
    %23 = vector.broadcast %cst_7 : f32 to vector<8x16xf32>
    %24 = vector.broadcast %cst_8 : f32 to vector<8x16xf32>
    %25 = arith.select %22, %23, %24 : vector<8x16xi1>, vector<8x16xf32>
    %26 = arith.addf %16, %25 : vector<8x16xf32>
    %cst_9 = arith.constant dense<0.000000e+00> : vector<8x32xf32>
    %27 = tpu.matmul %26, %0, %cst_9 {dimension_numbers = #tpu.dot_dimension_numbers<[1], [0], [0], [1], [0, 0, 1, 1], [], []>} : vector<8x16xf32>, vector<16x32xf32>, vector<8x32xf32> -> vector<8x32xf32>
    %28 = vector.extract_strided_slice %27 {offsets = [0, 0], sizes = [1, 32], strides = [1, 1]} : vector<8x32xf32> to vector<1x32xf32>
    %29 = math.tanh %28 : vector<1x32xf32>
    %30 = vector.extract_strided_slice %27 {offsets = [1, 0], sizes = [1, 32], strides = [1, 1]} : vector<8x32xf32> to vector<1x32xf32>
    %cst_10 = arith.constant dense<0.000000e+00> : vector<1x32xf32>
    %31 = tpu.matmul %29, %1, %cst_10 {dimension_numbers = #tpu.dot_dimension_numbers<[1], [0], [0], [1], [0, 0, 1, 1], [], []>} : vector<1x32xf32>, vector<32x32xf32>, vector<1x32xf32> -> vector<1x32xf32>
    %32 = arith.addf %30, %31 : vector<1x32xf32>
    %33 = math.tanh %32 : vector<1x32xf32>
    %34 = tpu.iota {dimensions = array<i32: 0>} : vector<8x32xi32>
    %cst_11 = arith.constant 0.000000e+00 : f32
    %35 = vector.broadcast %cst_11 : f32 to vector<8x32xf32>
    %c0_i32_12 = arith.constant 0 : i32
    %36 = vector.broadcast %c0_i32_12 : i32 to vector<8x32xi32>
    %37 = arith.cmpi eq, %34, %36 : vector<8x32xi32>
    %38 = vector.shape_cast %29 : vector<1x32xf32> to vector<1x32xf32>
    %39 = vector.broadcast %38 : vector<1x32xf32> to vector<8x32xf32>
    %40 = arith.select %37, %39, %35 : vector<8x32xi1>, vector<8x32xf32>
    %c1_i32_13 = arith.constant 1 : i32
    %41 = vector.broadcast %c1_i32_13 : i32 to vector<8x32xi32>
    %42 = arith.cmpi eq, %34, %41 : vector<8x32xi32>
    %43 = vector.shape_cast %33 : vector<1x32xf32> to vector<1x32xf32>
    %44 = vector.broadcast %43 : vector<1x32xf32> to vector<8x32xf32>
    %45 = arith.select %42, %44, %40 : vector<8x32xi1>, vector<8x32xf32>
    %cst_14 = arith.constant dense<0.000000e+00> : vector<8x128xf32>
    %46 = tpu.matmul %45, %2, %cst_14 {dimension_numbers = #tpu.dot_dimension_numbers<[1], [0], [0], [1], [0, 0, 1, 1], [], []>} : vector<8x32xf32>, vector<32x128xf32>, vector<8x128xf32> -> vector<8x128xf32>
    %47 = vector.broadcast %3 : vector<1x128xf32> to vector<8x128xf32>
    %48 = arith.addf %46, %47 : vector<8x128xf32>
    %cst_15 = arith.constant dense<0xFF800000> : vector<8xf32>
    %49 = vector.multi_reduction <maximumf>, %48, %cst_15 [1] : vector<8x128xf32> to vector<8xf32>
    %50 = vector.shape_cast %49 : vector<8xf32> to vector<8x1xf32>
    %51 = vector.broadcast %50 : vector<8x1xf32> to vector<8x128xf32>
    %52 = arith.subf %48, %51 : vector<8x128xf32>
    %53 = math.exp %52 : vector<8x128xf32>
    %cst_16 = arith.constant dense<0.000000e+00> : vector<8xf32>
    %54 = vector.multi_reduction <add>, %53, %cst_16 [1] : vector<8x128xf32> to vector<8xf32>
    %55 = vector.shape_cast %54 : vector<8xf32> to vector<8x1xf32>
    %56 = vector.broadcast %55 : vector<8x1xf32> to vector<8x128xf32>
    %57 = arith.divf %53, %56 : vector<8x128xf32>
    %c0_17 = arith.constant 0 : index
    %c0_18 = arith.constant 0 : index
    %58 = vector.load %arg2[%c0_17, %c0_18] : memref<8x128xf32, #tpu.memory_space<vmem>>, vector<8x128xf32>
    tpu.vector_store %arg2[%c0_17, %c0_18], %57 {strides = array<i32>} : memref<8x128xf32, #tpu.memory_space<vmem>>, vector<8x128xf32>,
    return
  }
}

</mosaic_0001>

<bundles_post_ra>
// kernel: rnn_head_forward.1
= control target key start
LH: loop header
LB: loop body
LE: loop exit
PB: predicated region body
PF: predicated region fallthrough
CT: control target
= control target key end

     0   :  { %7 = vsyncpa [#allocation4], 0  ;;  %s460_s0 = inlined_call_operand.vmem [shape: s32[2], index: 0, kind: input, shape index: {}]   ;;  %s461_s1 = inlined_call_operand.hbm [shape: f32[88,128], index: 1, kind: input, shape index: {}]   ;;  %s462_s2 = inlined_call_operand.vmem [shape: f32[8,128], index: 2, kind: output, shape index: {}]  }
   0x1   :  { %s15_s11 = sshll.u32 %s460_s0, 4  ;;  %s16_s11 = int_to_ptr.vmem [resolvable:$true] %s15_s11 }
   0x2   :  { %8 = vsyncpa [#allocation3], 0  ;;  %s385_s12 = scalar_lea.vmem %s16_s11, 16  ;;  %p390_p1 = scmp.lt.s32.totalorder %s16_s11, %s16_s11 }
   0x3   :  { %p386_p0 = scmp.ne.s32.totalorder %s16_s11, %s385_s12  ;;  %p391_p2 = scmp.lt.s32.totalorder %s385_s12, %s385_s12 }
   0x5   :  { %p392_p3 = por %p391_p2, %p390_p1 }
   0x7   :  { %p393_p4 = pnand %p392_p3, %p386_p0 }
   0x9   :  { %396 = shalt.err (!%p393_p4)
}
   0xa   :  { %s421_s13 = smov [#allocation2]   ;;  %s422_s14 = smov [#allocation5]  }
   0xb   :  { %18 = dma.vmem_to_smem %s16_s11, 16, %s421_s13, [#allocation4]  }
   0xc   :  { %s24_s15 = sshll.u32 %s422_s14, 4  ;;  %s25_s15 = int_to_ptr.vmem [resolvable:$true] %s24_s15 }
   0xd   :  { %s405_s16 = scalar_lea.vmem %s25_s15, 1408  ;;  %p410_p6 = scmp.lt.s32.totalorder %s25_s15, %s25_s15 }
   0xe   :  { %p406_p5 = scmp.ne.s32.totalorder %s25_s15, %s405_s16  ;;  %p411_p7 = scmp.lt.s32.totalorder %s405_s16, %s405_s16 }
  0x10   :  { %p412_p8 = por %p411_p7, %p410_p6 }
  0x12   :  { %p413_p9 = pnand %p412_p8, %p406_p5 }
  0x14   :  { %416 = shalt.err (!%p413_p9)
}
  0x15   :  { %s423_s0 = smov 128   ;;  %s424_s17 = smov 8  }
  0x16   :  { %30 = dma.hbm_to_vmem [thread:$0]  %s461_s1, 1408, %s25_s15, [#allocation3], %s423_s0, %s423_s0, %s424_s17  }
  0x17   :  { %417 = dma.done.wait [#allocation4], 16  }
  0x18   :  { %418 = vsyncadd [#allocation4], 4294967280 }
  0x19   :  { %419 = dma.done.wait [#allocation3], 1408  }
  0x1a   :  { %420 = vsyncadd [#allocation3], 4294965888 }
  0x1b   :  { %37 = sfence }
  0x1c   :  { %v39_v0 = vld [vmem:[#allocation5 + $0x8] sm:$0xff]  ;;  %v49_v1 = vlaneseq  ;;  %s54_s20 = sld [smem:[#allocation2]]  ;;  %v425_v2 = vmov 0.0   ;;  %v38_v3 = vld [vmem:[#allocation5] sm:$0xff]  ;;  %vm426_vm0 = vmmov 0   ;;  %vm67_vm7 = vcmask 130048  }
  0x1d   :  { %342 = vmatprep.subr.mxu0 %v425_v2  ;;  %346 = vmatprep.mubr.msk.f32.mxu0 %vm426_vm0, %v425_v2  ;;  %s324_s21 = sld [smem:[#allocation2 + $0x1]]  ;;  %v43_v11 = vld [vmem:[#allocation5 + $0x28] sm:$0xff]  ;;  %v42_v12 = vld [vmem:[#allocation5 + $0x20] sm:$0xff]  ;;  %v41_v13 = vld [vmem:[#allocation5 + $0x18] sm:$0xff]  ;;  %vm142_vm8 = vcmask 261120  }
  0x1e   :  { %343 = vmatpush3.msra.mxu0 %v39_v0  ;;  %v50_v4 = vshrl.u32 %v49_v1, 7  ;;  %349 = vmatprep.subr.mxu1 %v425_v2  ;;  %v52_v5 = vand.u32 127, %v49_v1  ;;  %v40_v14 = vld [vmem:[#allocation5 + $0x10] sm:$0xff]  ;;  %v47_v18 = vld [vmem:[#allocation5 + $0x48] sm:$0xff]  ;;  %v46_v19 = vld [vmem:[#allocation5 + $0x40] sm:$0xff] }
  0x1f   :  { %344 = vmatprep.subr.mxu0 %v425_v2  ;;  %357 = vmatprep.mubr.msk.f32.mxu1 %vm426_vm0, %v425_v2  ;;  %v45_v20 = vld [vmem:[#allocation5 + $0x38] sm:$0xff]  ;;  %v44_v21 = vld [vmem:[#allocation5 + $0x30] sm:$0xff] }
  0x20   :  { %345 = vmatpush3.msra.mxu0 %v38_v3  ;;  %vm53_vm1 = vcmp.eq.s32.totalorder %v50_v4, 0  ;;  %vm60_vm2 = vcmp.eq.s32.totalorder %v50_v4, 1  ;;  %350 = vmatpush3.msra.mxu1 %v43_v11  ;;  %v223_v26 = vsub.s32 0, %v50_v4  ;;  %v228_v27 = vsub.s32 1, %v50_v4  ;;  %v327_v33 = vld [vmem:[#allocation5 + $0x50] ss:$0 sm:$0xff] }
  0x21   :  { %360 = vmatprep.subr.mxu0 %v425_v2  ;;  %351 = vmatprep.subr.mxu1 %v425_v2 }
  0x22   :  { %v55_v6 = vstv %s54_s20  ;;  %352 = vmatpush3.msra.mxu1 %v42_v12 }
  0x23   :  { %vm56_vm3 = vcmp.eq.s32.totalorder %v52_v5, %v55_v6  ;;  %v62_v7 = vstv %s324_s21  ;;  %353 = vmatprep.subr.mxu1 %v425_v2 }
  0x24   :  { %vm57_vm4 = vmand %vm53_vm1, %vm56_vm3  ;;  %vm63_vm5 = vcmp.eq.s32.totalorder %v52_v5, %v62_v7  ;;  %354 = vmatpush3.msra.mxu1 %v41_v13 }
  0x25   :  { %v58_v8 = vsel %vm57_vm4, 1.0, %v425_v2  ;;  %vm64_vm6 = vmand %vm60_vm2, %vm63_vm5  ;;  %355 = vmatprep.subr.mxu1 %v425_v2 }
  0x26   :  { %v65_v9 = vsel %vm64_vm6, 1.0, %v425_v2  ;;  %356 = vmatpush3.msra.mxu1 %v40_v14 }
  0x27   :  { %v66_v10 = vadd.f32 %v65_v9, %v58_v8 }
  0x29   :  { %347 = vmatmul.mubr.msk.f32.vlgmr.msra.gmra.mxu0 %vm67_vm7, %v66_v10 }
  0x2a   :  { %368 = vmatprep.mubr.msk.f32.mxu0 %vm426_vm0, %v425_v2  ;;  %361 = vmatpush3.msra.mxu0 %v47_v18 }
  0x2b   :  { %362 = vmatprep.subr.mxu0 %v425_v2 }
  0x2c   :  { %363 = vmatpush3.msra.mxu0 %v46_v19 }
  0x2d   :  { %364 = vmatprep.subr.mxu0 %v425_v2 }
  0x2e   :  { %365 = vmatpush3.msra.mxu0 %v45_v20 }
  0x2f   :  { %366 = vmatprep.subr.mxu0 %v425_v2 }
  0x30   :  { %367 = vmatpush3.msra.mxu0 %v44_v21 }
  0xe9   :  { %v137_v15 = vpop.f32.mrf.mxu0 }
  0xea   :  { %377 = vtanh.f32 %v137_v15 }
  0xeb   :  { %v348_v16 = vpop.f32.mrf.mxu0 }
  0xf7   :  { %v378_v17 = vpop.eup %377 }
  0xf8   :  { %358 = vmatmul.mubr.msk.f32.vlgmr.msra.gmra.mxu1 %vm142_vm8, %v378_v17  ;;  %v224_v28 = vrot.slane %v378_v17, %v223_v26 }
  0xfa   :  { %v225_v31 = vsel %vm53_vm1, %v224_v28, 0.0 }
 0x1b8   :  { %v212_v22 = vpop.f32.mrf.mxu1 }
 0x1b9   :  { %v217_v23 = vrot.slane %v212_v22, 7 }
 0x1ba   :  { %v359_v24 = vpop.f32.mrf.mxu1 }
 0x1bb   :  { %v219_v25 = vadd.f32 %v217_v23, %v137_v15 }
 0x1bd   :  { %379 = vtanh.f32 %v219_v25 }
 0x1ca   :  { %v380_v29 = vpop.eup %379 }
 0x1cb   :  { %v229_v30 = vrot.slane %v380_v29, %v228_v27 }
 0x1cd   :  { %v230_v32 = vsel %vm60_vm2, %v229_v30, %v225_v31 }
 0x1ce   :  { %369 = vmatmul.mubr.msk.f32.vlgmr.msra.gmra.mxu0 %vm142_vm8, %v230_v32 }
 0x28e   :  { %v304_v34 = vpop.f32.mrf.mxu0 }
 0x28f   :  { %v305_v35 = vadd.f32 %v327_v33, %v304_v34 }
 0x290   :  { %v370_v36 = vpop.f32.mrf.mxu0 }
 0x291   :  { %308 = vmax.xlane.f32.xlu0 %v305_v35 }
 0x31a   :  { %v309_v37 = vpop.xlane.xlu0 %308 }
 0x31b   :  { %v310_v38 = vsub.f32 %v305_v35, %v309_v37 }
 0x31d   :  { %v311_v39 = vmul.f32 1.442695, %v310_v38 }
 0x31f   :  { %381 = vpow2.f32 %v311_v39 }
 0x32c   :  { %v382_v40 = vpop.eup %381 }
 0x32d   :  { %313 = vadd.xlane.f32.xlu0 %v382_v40 }
 0x3b6   :  { %v314_v41 = vpop.xlane.xlu0 %313 }
 0x3b7   :  { %383 = vrcp.f32 %v314_v41 }
 0x3c4   :  { %v384_v42 = vpop.eup %383 }
 0x3c5   :  { %v316_v43 = vmul.f32 %v384_v42, %v382_v40 }
 0x3c7   :  { %317 = vst [vmem:[%s462_s2] sm:$0xff] %v316_v43 }
 0x3c8   :  { %322 = vsyncpa [#allocation3], 1 }
 0x3c9   :  { %323 = vsyncpa [#allocation4], 1 }

</bundles_post_ra>
